<compile_context>
chip_gen: v7x
topology: tpu7x:2x2x1
jax: 0.10.0
libtpu: 0.0.40
codegen_flags: <defaults>
</compile_context>

<pallas_src>
import numpy as np
import jax
import jax.numpy as jnp
from jax.experimental import pallas as pl
from jax.experimental.pallas import tpu as pltpu


_LANES = 128            # lane (fast) dimension of the flattened layout
_ROW_UNIT = 32          # rows kept a multiple of 32 -> int8 & f32 tile aligned
_MAX_BLOCK_ROWS = 1024  # ~1.5 MiB of input traffic per grid step, ~2.3 MiB VMEM


def _round_up(x, m):
    return (x + m - 1) // m * m


# ----------------------------------------------------------------------------
# Kernel factory: fused rescale + reciprocal-divide + mask + (8,128) moment
# accumulation.  block_rows / rows / needs_tail are trace-time constants.
# ----------------------------------------------------------------------------
def _make_segloss_kernel(block_rows, rows, needs_tail):
    groups = block_rows // 8  # block_rows is always a multiple of 8

    def kernel(scal_ref, a_ref, b_ref, t_ref, n_ref, s_ref, q_ref):
        step = pl.program_id(0)

        @pl.when(step == 0)
        def _():
            n_ref[...] = jnp.zeros_like(n_ref)
            s_ref[...] = jnp.zeros_like(s_ref)
            q_ref[...] = jnp.zeros_like(q_ref)

        mina = scal_ref[0]
        spana = scal_ref[1]
        minb = scal_ref[2]
        spanb = scal_ref[3]
        c0 = scal_ref[4]          # fixed shift point for the one-pass variance

        av = a_ref[...] * spana + mina
        bv = b_ref[...] * spanb + minb

        # approx reciprocal on the EUP + one Newton-Raphson refinement (2 FMAs)
        r = pl.reciprocal(bv, approx=True)
        r = r * (2.0 - bv * r)
        c = av * r

        m = t_ref[...] != 0
        if needs_tail:
            # Last block may extend past the array; mask out garbage rows.
            row0 = step * block_rows
            rid = jax.lax.broadcasted_iota(jnp.int32, (block_rows, _LANES), 0)
            m = jnp.logical_and(m, (rid + row0) < rows)

        d = jnp.where(m, c - c0, 0.0)   # unselected / garbage voxels -> 0
        mf = m.astype(jnp.float32)

        # Tree-reduce the block contribution to one (8,128) vreg per moment
        # (whole-tile reshape, pure vreg adds -> no XLU, no tile crossing).
        def fold(x):
            return x.reshape(groups, 8, _LANES).sum(axis=0)

        n_ref[...] += fold(mf)
        s_ref[...] += fold(d)
        q_ref[...] += fold(d * d)

    return kernel


def _masked_moments(a2, b2, t2, scal, rows):
    """(n, sum(c-c0), sum((c-c0)^2)) over elements where the mask is nonzero."""
    block_rows = rows if rows <= _MAX_BLOCK_ROWS else _MAX_BLOCK_ROWS
    nsteps = pl.cdiv(rows, block_rows)
    needs_tail = (rows % block_rows) != 0

    data_spec = pl.BlockSpec((block_rows, _LANES), lambda i: (i, 0))
    mask_spec = pl.BlockSpec((block_rows, _LANES), lambda i: (i, 0))
    acc_spec = pl.BlockSpec((8, _LANES), lambda i: (0, 0))
    acc_shape = jax.ShapeDtypeStruct((8, _LANES), jnp.float32)

    n_p, s_p, q_p = pl.pallas_call(
        _make_segloss_kernel(block_rows, rows, needs_tail),
        grid=(nsteps,),
        in_specs=[
            pl.BlockSpec(memory_space=pltpu.MemorySpace.SMEM),  # scalar params
            data_spec,   # a (f32)
            data_spec,   # b (f32)
            mask_spec,   # ts (int8)
        ],
        out_specs=(acc_spec, acc_spec, acc_spec),
        out_shape=(acc_shape, acc_shape, acc_shape),
        compiler_params=pltpu.CompilerParams(
            dimension_semantics=("arbitrary",)),
    )(scal, a2, b2, t2)

    # Tiny final combine of the (8,128) partials (plain JAX glue).
    return jnp.sum(n_p), jnp.sum(s_p), jnp.sum(q_p)


# ----------------------------------------------------------------------------
# Wrapper reproducing SegLoss_total.forward
# ----------------------------------------------------------------------------
def seg_loss_total(a, b, ts, mina, maxa, minb, maxb):
    a_flat = jnp.ravel(a).astype(jnp.float32)
    b_flat = jnp.ravel(b).astype(jnp.float32)
    t_raw = jnp.ravel(ts)
    if t_raw.dtype == jnp.bool_:
        t_flat = t_raw.astype(jnp.int8)          # 1 B/elem stream
    else:
        t_flat = (t_raw != 0).astype(jnp.int8)

    mina = jnp.asarray(mina, jnp.float32)
    maxa = jnp.asarray(maxa, jnp.float32)
    minb = jnp.asarray(minb, jnp.float32)
    maxb = jnp.asarray(maxb, jnp.float32)

    spana = maxa - mina
    spanb = maxb - minb
    # Shift point ~ typical value of c, for cancellation-resistant one-pass var.
    denom = minb + maxb
    safe_denom = jnp.where(denom != 0.0, denom, 1.0)
    c0 = jnp.where(denom != 0.0, (mina + maxa) / safe_denom, 0.0)
    scal = jnp.stack([mina, spana, minb, spanb, c0]).astype(jnp.float32)

    # Lay out as (rows, 128); rows kept a multiple of 32 so all blocks are
    # tile-aligned for both f32 and int8.  The pad copy only happens for
    # element counts that are not multiples of 4096 (common volumes skip it).
    # TODO(synk): handle fully ragged tails in-kernel to drop this pad too.
    n_elem = a_flat.shape[0]
    unit = _ROW_UNIT * _LANES
    padded = _round_up(max(n_elem, 1), unit)
    if padded != n_elem:
        pad = padded - n_elem
        a_flat = jnp.pad(a_flat, (0, pad))
        b_flat = jnp.pad(b_flat, (0, pad))
        t_flat = jnp.pad(t_flat, (0, pad))      # pads with 0 -> excluded
    rows = padded // _LANES

    a2 = a_flat.reshape(rows, _LANES)
    b2 = b_flat.reshape(rows, _LANES)
    t2 = t_flat.reshape(rows, _LANES)

    n, s, q = _masked_moments(a2, b2, t2, scal, rows)

    mean = c0 + s / n
    var = (q - s * s / n) / (n - 1.0)   # unbiased, matches torch.var default
    return var / mean


# ----------------------------------------------------------------------------
# Pure-numpy (float64) reference mirroring the PyTorch forward
# ----------------------------------------------------------------------------
def reference(a, b, ts, mina, maxa, minb, maxb):
    an = np.asarray(a, np.float64) * (maxa - mina) + mina
    bn = np.asarray(b, np.float64) * (maxb - minb) + minb
    c = an / bn
    sel = c[np.asarray(ts)]
    return sel.var(ddof=1) / sel.mean()


if __name__ == "__main__":
    key = jax.random.PRNGKey(0)
    k1, k2, k3 = jax.random.split(key, 3)

    shape = (2, 1, 16, 16, 16)   # N, C, D, H, W
    a = jax.random.uniform(k1, shape, dtype=jnp.float32)
    b = jax.random.uniform(k2, shape, dtype=jnp.float32)
    ts = jax.random.uniform(k3, shape) > 0.4     # boolean selection mask
    mina, maxa, minb, maxb = 0.5, 2.0, 1.0, 3.0

    loss = jax.jit(seg_loss_total)(a, b, ts, mina, maxa, minb, maxb)
    loss = jax.block_until_ready(loss)

    ref = reference(a, b, ts, mina, maxa, minb, maxb)
    np.testing.assert_allclose(float(loss), ref, rtol=1e-3)
    print("KERNEL_OK")
</pallas_src>

<mosaic_0001>
module attributes {stable_mosaic.version = 11 : i64} {
  func.func @kernel(%arg0: i32, %arg1: memref<5xf32, #tpu.memory_space<smem>>, %arg2: memref<64x128xf32, #tpu.memory_space<vmem>>, %arg3: memref<64x128xf32, #tpu.memory_space<vmem>>, %arg4: memref<64x128xi8, #tpu.memory_space<vmem>>, %arg5: memref<8x128xf32, #tpu.memory_space<vmem>>, %arg6: memref<8x128xf32, #tpu.memory_space<vmem>>, %arg7: memref<8x128xf32, #tpu.memory_space<vmem>>) attributes {dimension_semantics = [#tpu.dimension_semantics<arbitrary>], iteration_bounds = array<i64: 1>, scalar_prefetch = 0 : i64, scratch_operands = 0 : i64, tpu.core_type = #tpu.core_type<tc>, window_params = [{transform_indices = @transform_0, window_bounds = array<i64: 5>}, {transform_indices = @transform_1, window_bounds = array<i64: 64, 128>}, {transform_indices = @transform_2, window_bounds = array<i64: 64, 128>}, {transform_indices = @transform_3, window_bounds = array<i64: 64, 128>}, {pipeline_mode = #tpu.pipeline_mode<synchronous>, transform_indices = @transform_4, window_bounds = array<i64: 8, 128>}, {pipeline_mode = #tpu.pipeline_mode<synchronous>, transform_indices = @transform_5, window_bounds = array<i64: 8, 128>}, {pipeline_mode = #tpu.pipeline_mode<synchronous>, transform_indices = @transform_6, window_bounds = array<i64: 8, 128>}]} {
    %c0_i32 = arith.constant 0 : i32
    %0 = arith.cmpi eq, %arg0, %c0_i32 : i32
    %1 = arith.extui %0 : i1 to i32
    %c0_i32_0 = arith.constant 0 : i32
    %2 = arith.cmpi ne, %1, %c0_i32_0 : i32
    scf.if %2 {
      %cst_23 = arith.constant 0.000000e+00 : f32
      %49 = vector.broadcast %cst_23 : f32 to vector<8x128xf32>
      %c0_24 = arith.constant 0 : index
      %c0_25 = arith.constant 0 : index
      %50 = vector.load %arg5[%c0_24, %c0_25] : memref<8x128xf32, #tpu.memory_space<vmem>>, vector<8x128xf32>
      tpu.vector_store %arg5[%c0_24, %c0_25], %49 {strides = array<i32>} : memref<8x128xf32, #tpu.memory_space<vmem>>, vector<8x128xf32>,
      %cst_26 = arith.constant 0.000000e+00 : f32
      %51 = vector.broadcast %cst_26 : f32 to vector<8x128xf32>
      %c0_27 = arith.constant 0 : index
      %c0_28 = arith.constant 0 : index
      %52 = vector.load %arg6[%c0_27, %c0_28] : memref<8x128xf32, #tpu.memory_space<vmem>>, vector<8x128xf32>
      tpu.vector_store %arg6[%c0_27, %c0_28], %51 {strides = array<i32>} : memref<8x128xf32, #tpu.memory_space<vmem>>, vector<8x128xf32>,
      %cst_29 = arith.constant 0.000000e+00 : f32
      %53 = vector.broadcast %cst_29 : f32 to vector<8x128xf32>
      %c0_30 = arith.constant 0 : index
      %c0_31 = arith.constant 0 : index
      %54 = vector.load %arg7[%c0_30, %c0_31] : memref<8x128xf32, #tpu.memory_space<vmem>>, vector<8x128xf32>
      tpu.vector_store %arg7[%c0_30, %c0_31], %53 {strides = array<i32>} : memref<8x128xf32, #tpu.memory_space<vmem>>, vector<8x128xf32>,
    } else {
    }
    %c0 = arith.constant 0 : index
    %3 = memref.load %arg1[%c0] : memref<5xf32, #tpu.memory_space<smem>>
    %c1 = arith.constant 1 : index
    %4 = memref.load %arg1[%c1] : memref<5xf32, #tpu.memory_space<smem>>
    %c2 = arith.constant 2 : index
    %5 = memref.load %arg1[%c2] : memref<5xf32, #tpu.memory_space<smem>>
    %c3 = arith.constant 3 : index
    %6 = memref.load %arg1[%c3] : memref<5xf32, #tpu.memory_space<smem>>
    %c4 = arith.constant 4 : index
    %7 = memref.load %arg1[%c4] : memref<5xf32, #tpu.memory_space<smem>>
    %c0_1 = arith.constant 0 : index
    %c0_2 = arith.constant 0 : index
    %8 = vector.load %arg2[%c0_1, %c0_2] : memref<64x128xf32, #tpu.memory_space<vmem>>, vector<64x128xf32>
    %9 = vector.broadcast %4 : f32 to vector<64x128xf32>
    %10 = arith.mulf %8, %9 : vector<64x128xf32>
    %11 = vector.broadcast %3 : f32 to vector<64x128xf32>
    %12 = arith.addf %10, %11 : vector<64x128xf32>
    %c0_3 = arith.constant 0 : index
    %c0_4 = arith.constant 0 : index
    %13 = vector.load %arg3[%c0_3, %c0_4] : memref<64x128xf32, #tpu.memory_space<vmem>>, vector<64x128xf32>
    %14 = vector.broadcast %6 : f32 to vector<64x128xf32>
    %15 = arith.mulf %13, %14 : vector<64x128xf32>
    %16 = vector.broadcast %5 : f32 to vector<64x128xf32>
    %17 = arith.addf %15, %16 : vector<64x128xf32>
    %18 = tpu.reciprocal %17 {approx = true} : vector<64x128xf32> -> vector<64x128xf32>
    %19 = arith.mulf %17, %18 : vector<64x128xf32>
    %cst = arith.constant 2.000000e+00 : f32
    %20 = vector.broadcast %cst : f32 to vector<64x128xf32>
    %21 = arith.subf %20, %19 : vector<64x128xf32>
    %22 = arith.mulf %18, %21 : vector<64x128xf32>
    %23 = arith.mulf %12, %22 : vector<64x128xf32>
    %c0_5 = arith.constant 0 : index
    %c0_6 = arith.constant 0 : index
    %24 = vector.load %arg4[%c0_5, %c0_6] : memref<64x128xi8, #tpu.memory_space<vmem>>, vector<64x128xi8>
    %c0_i8 = arith.constant 0 : i8
    %25 = vector.broadcast %c0_i8 : i8 to vector<64x128xi8>
    %26 = arith.cmpi ne, %24, %25 : vector<64x128xi8>
    %27 = vector.broadcast %7 : f32 to vector<64x128xf32>
    %28 = arith.subf %23, %27 : vector<64x128xf32>
    %cst_7 = arith.constant 0.000000e+00 : f32
    %29 = vector.broadcast %cst_7 : f32 to vector<64x128xf32>
    %30 = arith.select %26, %28, %29 : vector<64x128xi1>, vector<64x128xf32>
    %31 = arith.extui %26 : vector<64x128xi1> to vector<64x128xi32>
    %32 = arith.sitofp %31 : vector<64x128xi32> to vector<64x128xf32>
    %c0_8 = arith.constant 0 : index
    %c0_9 = arith.constant 0 : index
    %33 = vector.load %arg5[%c0_8, %c0_9] : memref<8x128xf32, #tpu.memory_space<vmem>>, vector<8x128xf32>
    %34 = vector.shape_cast %32 : vector<64x128xf32> to vector<8x8x128xf32>
    %cst_10 = arith.constant dense<0.000000e+00> : vector<8x128xf32>
    %35 = vector.multi_reduction <add>, %34, %cst_10 [0] : vector<8x8x128xf32> to vector<8x128xf32>
    %36 = arith.addf %33, %35 : vector<8x128xf32>
    %c0_11 = arith.constant 0 : index
    %c0_12 = arith.constant 0 : index
    %37 = vector.load %arg5[%c0_11, %c0_12] : memref<8x128xf32, #tpu.memory_space<vmem>>, vector<8x128xf32>
    tpu.vector_store %arg5[%c0_11, %c0_12], %36 {strides = array<i32>} : memref<8x128xf32, #tpu.memory_space<vmem>>, vector<8x128xf32>,
    %c0_13 = arith.constant 0 : index
    %c0_14 = arith.constant 0 : index
    %38 = vector.load %arg6[%c0_13, %c0_14] : memref<8x128xf32, #tpu.memory_space<vmem>>, vector<8x128xf32>
    %39 = vector.shape_cast %30 : vector<64x128xf32> to vector<8x8x128xf32>
    %cst_15 = arith.constant dense<0.000000e+00> : vector<8x128xf32>
    %40 = vector.multi_reduction <add>, %39, %cst_15 [0] : vector<8x8x128xf32> to vector<8x128xf32>
    %41 = arith.addf %38, %40 : vector<8x128xf32>
    %c0_16 = arith.constant 0 : index
    %c0_17 = arith.constant 0 : index
    %42 = vector.load %arg6[%c0_16, %c0_17] : memref<8x128xf32, #tpu.memory_space<vmem>>, vector<8x128xf32>
    tpu.vector_store %arg6[%c0_16, %c0_17], %41 {strides = array<i32>} : memref<8x128xf32, #tpu.memory_space<vmem>>, vector<8x128xf32>,
    %c0_18 = arith.constant 0 : index
    %c0_19 = arith.constant 0 : index
    %43 = vector.load %arg7[%c0_18, %c0_19] : memref<8x128xf32, #tpu.memory_space<vmem>>, vector<8x128xf32>
    %44 = arith.mulf %30, %30 : vector<64x128xf32>
    %45 = vector.shape_cast %44 : vector<64x128xf32> to vector<8x8x128xf32>
    %cst_20 = arith.constant dense<0.000000e+00> : vector<8x128xf32>
    %46 = vector.multi_reduction <add>, %45, %cst_20 [0] : vector<8x8x128xf32> to vector<8x128xf32>
    %47 = arith.addf %43, %46 : vector<8x128xf32>
    %c0_21 = arith.constant 0 : index
    %c0_22 = arith.constant 0 : index
    %48 = vector.load %arg7[%c0_21, %c0_22] : memref<8x128xf32, #tpu.memory_space<vmem>>, vector<8x128xf32>
    tpu.vector_store %arg7[%c0_21, %c0_22], %47 {strides = array<i32>} : memref<8x128xf32, #tpu.memory_space<vmem>>, vector<8x128xf32>,
    return
  }
  func.func @transform_0(%arg0: i32) -> i32 {
    %c0_i32 = arith.constant 0 : i32
    %c0_i32_0 = arith.constant 0 : i32
    return %c0_i32 : i32
  }
  func.func @transform_1(%arg0: i32) -> (i32, i32) {
    %c0_i32 = arith.constant 0 : i32
    %c0_i32_0 = arith.constant 0 : i32
    return %arg0, %c0_i32 : i32, i32
  }
  func.func @transform_2(%arg0: i32) -> (i32, i32) {
    %c0_i32 = arith.constant 0 : i32
    %c0_i32_0 = arith.constant 0 : i32
    return %arg0, %c0_i32 : i32, i32
  }
  func.func @transform_3(%arg0: i32) -> (i32, i32) {
    %c0_i32 = arith.constant 0 : i32
    %c0_i32_0 = arith.constant 0 : i32
    return %arg0, %c0_i32 : i32, i32
  }
  func.func @transform_4(%arg0: i32) -> (i32, i32) {
    %c0_i32 = arith.constant 0 : i32
    %c0_i32_0 = arith.constant 0 : i32
    %c0_i32_1 = arith.constant 0 : i32
    return %c0_i32, %c0_i32_0 : i32, i32
  }
  func.func @transform_5(%arg0: i32) -> (i32, i32) {
    %c0_i32 = arith.constant 0 : i32
    %c0_i32_0 = arith.constant 0 : i32
    %c0_i32_1 = arith.constant 0 : i32
    return %c0_i32, %c0_i32_0 : i32, i32
  }
  func.func @transform_6(%arg0: i32) -> (i32, i32) {
    %c0_i32 = arith.constant 0 : i32
    %c0_i32_0 = arith.constant 0 : i32
    %c0_i32_1 = arith.constant 0 : i32
    return %c0_i32, %c0_i32_0 : i32, i32
  }
}

</mosaic_0001>

<bundles_post_ra>
// kernel: seg_loss_total.1
= control target key start
LH: loop header
LB: loop body
LE: loop exit
PB: predicated region body
PF: predicated region fallthrough
CT: control target
= control target key end

     0   :  { %12 = vsyncpa [#allocation3], 0  ;;  %s507_s0 = inlined_call_operand.vmem [shape: f32[5], index: 0, kind: input, shape index: {}]   ;;  %s508_s1 = inlined_call_operand.vmem [shape: f32[64,128], index: 1, kind: input, shape index: {}]   ;;  %s509_s2 = inlined_call_operand.vmem [shape: f32[64,128], index: 2, kind: input, shape index: {}]   ;;  %s510_s3 = inlined_call_operand.vmem [shape: s8[64,128], index: 3, kind: input, shape index: {}]   ;;  %s511_s4 = inlined_call_operand.vmem [shape: f32[8,128], index: 4, kind: output, shape index: {0}]   ;;  %s512_s5 = inlined_call_operand.vmem [shape: f32[8,128], index: 5, kind: output, shape index: {1}]   ;;  %s513_s6 = inlined_call_operand.vmem [shape: f32[8,128], index: 6, kind: output, shape index: {2}]  }
   0x1   :  { %s19_s23 = sshll.u32 %s507_s0, 4  ;;  %s20_s23 = int_to_ptr.vmem [resolvable:$true] %s19_s23 }
   0x2   :  { %s316_s24 = scalar_lea.vmem %s20_s23, 16  ;;  %p321_p1 = scmp.lt.s32.totalorder %s20_s23, %s20_s23 }
   0x3   :  { %p317_p0 = scmp.ne.s32.totalorder %s20_s23, %s316_s24  ;;  %p322_p2 = scmp.lt.s32.totalorder %s316_s24, %s316_s24 }
   0x5   :  { %p323_p3 = por %p322_p2, %p321_p1 }
   0x7   :  { %p324_p4 = pnand %p323_p3, %p317_p0 }
   0x9   :  { %327 = shalt.err (!%p324_p4)
}
   0xa   :  { %s330_s25 = smov [#allocation2]  }
   0xb   :  { %22 = dma.vmem_to_smem %s20_s23, 16, %s330_s25, [#allocation3]  }
   0xc   :  { %328 = dma.done.wait [#allocation3], 16  }
   0xd   :  { %329 = vsyncadd [#allocation3], 4294967280 }
   0xe   :  { %32 = sfence }
   0xf   :  { %v139_v0 = vld [vmem:[%s510_s3] sm:$0xff]  ;;  %v140_v1 = vld [vmem:[%s510_s3 + $0x8] sm:$0xff]  ;;  %v331_v2 = vmov 0   ;;  %s377_s0 = sld [smem:[#allocation2 + $0x2]]  ;;  %s379_s3 = sld [smem:[#allocation2 + $0x3]]  ;;  %v332_v45 = vmov 0.0  }
  0x10   :  { %vm141_vm0 = vnez %v139_v0  ;;  %vm142_vm1 = vnez %v140_v1  ;;  %v73_v58 = vld [vmem:[%s509_s2] sm:$0xff]  ;;  %v74_v59 = vld [vmem:[%s509_s2 + $0x8] sm:$0xff]  ;;  %v75_v60 = vld [vmem:[%s509_s2 + $0x10] sm:$0xff]  ;;  %s285_s22 = sld [smem:[#allocation2 + $0x1]]  ;;  %s479_s13 = sld [smem:[#allocation2 + $0x4]] }
  0x11   :  { %v152_v3 = vsel %vm141_vm0, 16843009, %v331_v2  ;;  %v153_v4 = vsel %vm142_vm1, 16843009, %v331_v2  ;;  %v76_v0 = vld [vmem:[%s509_s2 + $0x18] sm:$0xff]  ;;  %v77_v1 = vld [vmem:[%s509_s2 + $0x20] sm:$0xff] }
  0x12   :  { %v154_v5 = vunpack.c.0.s8 %v152_v3  ;;  %v155_v6 = vunpack.c.1.s8 %v152_v3  ;;  %v156_v7 = vunpack.c.2.s8 %v152_v3  ;;  %v157_v8 = vunpack.c.3.s8 %v152_v3 }
  0x13   :  { %v158_v9 = vunpack.c.0.s8 %v153_v4  ;;  %v159_v10 = vunpack.c.1.s8 %v153_v4  ;;  %v160_v11 = vunpack.c.2.s8 %v153_v4  ;;  %v161_v12 = vunpack.c.3.s8 %v153_v4 }
  0x14   :  { %v162_v13 = vpack.c.b16 %v154_v5, %v154_v5  ;;  %v164_v14 = vpack.c.b16 %v155_v6, %v155_v6  ;;  %v166_v15 = vpack.c.b16 %v156_v7, %v156_v7  ;;  %v168_v16 = vpack.c.b16 %v157_v8, %v157_v8  ;;  %v79_v5 = vld [vmem:[%s509_s2 + $0x30] sm:$0xff] }
  0x15   :  { %v170_v17 = vpack.c.b16 %v158_v9, %v158_v9  ;;  %v172_v18 = vpack.c.b16 %v159_v10, %v159_v10  ;;  %v174_v19 = vpack.c.b16 %v160_v11, %v160_v11  ;;  %v176_v20 = vpack.c.b16 %v161_v12, %v161_v12  ;;  %v80_v9 = vld [vmem:[%s509_s2 + $0x38] sm:$0xff] }
  0x16   :  { %v163_v21 = vpack.c.b8 %v162_v13, %v162_v13  ;;  %v165_v22 = vpack.c.b8 %v164_v14, %v164_v14  ;;  %v167_v23 = vpack.c.b8 %v166_v15, %v166_v15  ;;  %v169_v24 = vpack.c.b8 %v168_v16, %v168_v16 }
  0x17   :  { %v171_v25 = vpack.c.b8 %v170_v17, %v170_v17  ;;  %v173_v26 = vpack.c.b8 %v172_v18, %v172_v18  ;;  %v175_v27 = vpack.c.b8 %v174_v19, %v174_v19  ;;  %v177_v28 = vpack.c.b8 %v176_v20, %v176_v20 }
  0x18   :  { %vm178_vm2 = vnez %v163_v21  ;;  %vm179_vm3 = vnez %v165_v22  ;;  %vm180_vm4 = vnez %v167_v23  ;;  %vm181_vm5 = vnez %v169_v24 }
  0x19   :  { %vm182_vm6 = vnez %v171_v25  ;;  %v186_v29 = vsel %vm178_vm2, 16843009, %v331_v2  ;;  %v187_v30 = vsel %vm179_vm3, 16843009, %v331_v2  ;;  %v188_v31 = vsel %vm180_vm4, 16843009, %v331_v2 }
  0x1a   :  { %vm183_vm7 = vnez %v173_v26  ;;  %v189_v32 = vsel %vm181_vm5, 16843009, %v331_v2  ;;  %v194_v33 = vunpack.c.0.s8 %v186_v29  ;;  %vm184_vm8 = vnez %v175_v27 }
  0x1b   :  { %vm185_vm9 = vnez %v177_v28  ;;  %v195_v34 = vunpack.c.0.s8 %v187_v30  ;;  %v196_v35 = vunpack.c.0.s8 %v188_v31  ;;  %v190_v36 = vsel %vm182_vm6, 16843009, %v331_v2  ;;  %v47_v31 = vld [vmem:[%s508_s1] sm:$0xff] }
  0x1c   :  { %v191_v37 = vsel %vm183_vm7, 16843009, %v331_v2  ;;  %v197_v38 = vunpack.c.0.s8 %v189_v32  ;;  %v192_v39 = vsel %vm184_vm8, 16843009, %v331_v2  ;;  %v193_v40 = vsel %vm185_vm9, 16843009, %v331_v2 }
  0x1d   :  { %vm381_vm10 = vcmp.ne.s32.totalorder %v194_v33, 0  ;;  %vm385_vm11 = vcmp.ne.s32.totalorder %v195_v34, 0  ;;  %v198_v43 = vunpack.c.0.s8 %v190_v36  ;;  %vm389_vm12 = vcmp.ne.s32.totalorder %v196_v35, 0  ;;  %v78_v2 = vld [vmem:[%s509_s2 + $0x28] sm:$0xff]  ;;  %s42_s2 = sld [smem:[#allocation2]]  ;;  %v49_v33 = vld [vmem:[%s508_s1 + $0x10] sm:$0xff] }
  0x1e   :  { %v289_v46 = vsel %vm381_vm10, 1.0, %v332_v45  ;;  %v290_v47 = vsel %vm385_vm11, 1.0, %v332_v45  ;;  %v291_v48 = vsel %vm389_vm12, 1.0, %v332_v45  ;;  %v199_v49 = vunpack.c.0.s8 %v191_v37  ;;  %v48_v32 = vld [vmem:[%s508_s1 + $0x8] sm:$0xff]  ;;  %v50_v35 = vld [vmem:[%s508_s1 + $0x18] sm:$0xff]  ;;  %v51_v36 = vld [vmem:[%s508_s1 + $0x20] sm:$0xff] }
  0x1f   :  { %v200_v50 = vunpack.c.0.s8 %v192_v39  ;;  %vm399_vm13 = vcmp.ne.s32.totalorder %v197_v38, 0  ;;  %v235_v52 = vadd.f32 %v290_v47, %v289_v46  ;;  %v201_v53 = vunpack.c.0.s8 %v193_v40  ;;  %v52_v37 = vld [vmem:[%s508_s1 + $0x28] sm:$0xff]  ;;  %v53_v38 = vld [vmem:[%s508_s1 + $0x30] sm:$0xff]  ;;  %v54_v39 = vld [vmem:[%s508_s1 + $0x38] sm:$0xff] }
  0x20   :  { %v292_v54 = vsel %vm399_vm13, 1.0, %v332_v45  ;;  %vm405_vm14 = vcmp.ne.s32.totalorder %v198_v43, 0  ;;  %vm420_vm15 = vcmp.ne.s32.totalorder %v199_v49, 0  ;;  %v81_v6 = vstv %s379_s3 }
  0x21   :  { %v236_v56 = vadd.f32 %v291_v48, %v235_v52  ;;  %v293_v57 = vsel %vm405_vm14, 1.0, %v332_v45  ;;  %vm424_vm0 = vcmp.ne.s32.totalorder %v200_v50, 0  ;;  %vm437_vm1 = vcmp.ne.s32.totalorder %v201_v53, 0 }
  0x22   :  { %v294_v4 = vsel %vm420_vm15, 1.0, %v332_v45  ;;  %v90_v7 = vstv %s377_s0  ;;  %v82_v10 = vmul.f32 %v81_v6, %v73_v58  ;;  %v83_v11 = vmul.f32 %v81_v6, %v74_v59 }
  0x23   :  { %v237_v63 = vadd.f32 %v292_v54, %v236_v56  ;;  %v84_v12 = vmul.f32 %v81_v6, %v75_v60  ;;  %v295_v13 = vsel %vm424_vm0, 1.0, %v332_v45  ;;  %v85_v14 = vmul.f32 %v81_v6, %v76_v0 }
  0x24   :  { %v86_v15 = vmul.f32 %v81_v6, %v77_v1  ;;  %v87_v16 = vmul.f32 %v81_v6, %v78_v2  ;;  %v88_v18 = vmul.f32 %v81_v6, %v79_v5  ;;  %v91_v19 = vadd.f32 %v90_v7, %v82_v10 }
  0x25   :  { %v238_v8 = vadd.f32 %v293_v57, %v237_v63  ;;  %v92_v20 = vadd.f32 %v90_v7, %v83_v11  ;;  %v296_v21 = vsel %vm437_vm1, 1.0, %v332_v45  ;;  %v89_v22 = vmul.f32 %v81_v6, %v80_v9 }
  0x26   :  { %v93_v23 = vadd.f32 %v90_v7, %v84_v12  ;;  %v94_v24 = vadd.f32 %v90_v7, %v85_v14  ;;  %v95_v26 = vadd.f32 %v90_v7, %v86_v15  ;;  %300 = vrcp.f32 %v91_v19 }
  0x27   :  { %v239_v17 = vadd.f32 %v294_v4, %v238_v8  ;;  %v96_v27 = vadd.f32 %v90_v7, %v87_v16  ;;  %302 = vrcp.f32 %v92_v20  ;;  %v97_v29 = vadd.f32 %v90_v7, %v88_v18 }
  0x28   :  { %304 = vrcp.f32 %v93_v23  ;;  %v98_v30 = vadd.f32 %v90_v7, %v89_v22  ;;  %v55_v34 = vstv %s285_s22  ;;  %v64_v48 = vstv %s42_s2 }
  0x29   :  { %v240_v25 = vadd.f32 %v295_v13, %v239_v17  ;;  %306 = vrcp.f32 %v94_v24  ;;  %v56_v40 = vmul.f32 %v55_v34, %v47_v31  ;;  %v57_v43 = vmul.f32 %v55_v34, %v48_v32 }
  0x2a   :  { %308 = vrcp.f32 %v95_v26  ;;  %v58_v45 = vmul.f32 %v55_v34, %v49_v33  ;;  %v59_v46 = vmul.f32 %v55_v34, %v50_v35  ;;  %v60_v47 = vmul.f32 %v55_v34, %v51_v36 }
  0x2b   :  { %v241_v28 = vadd.f32 %v296_v21, %v240_v25  ;;  %310 = vrcp.f32 %v96_v27  ;;  %v61_v50 = vmul.f32 %v55_v34, %v52_v37  ;;  %v62_v52 = vmul.f32 %v55_v34, %v53_v38 }
  0x2c   :  { %312 = vrcp.f32 %v97_v29  ;;  %v63_v54 = vmul.f32 %v55_v34, %v54_v39  ;;  %v65_v58 = vadd.f32 %v64_v48, %v56_v40  ;;  %v66_v59 = vadd.f32 %v64_v48, %v57_v43 }
  0x2d   :  { %243 = vst [vmem:[%s511_s4] sm:$0xff] %v241_v28  ;;  %314 = vrcp.f32 %v98_v30  ;;  %v67_v60 = vadd.f32 %v64_v48, %v58_v45  ;;  %v68_v1 = vadd.f32 %v64_v48, %v59_v46  ;;  %v69_v2 = vadd.f32 %v64_v48, %v60_v47 }
  0x2e   :  { %v70_v7 = vadd.f32 %v64_v48, %v61_v50  ;;  %v71_v8 = vadd.f32 %v64_v48, %v62_v52  ;;  %v72_v12 = vadd.f32 %v64_v48, %v63_v54 }
  0x30   :  { %v301_v49 = vpop.eup %300 }
  0x31   :  { %v303_v53 = vpop.eup %302  ;;  %v107_v56 = vmul.f32 %v301_v49, %v91_v19 }
  0x32   :  { %v305_v57 = vpop.eup %304  ;;  %v108_v63 = vmul.f32 %v303_v53, %v92_v20  ;;  %v143_v20 = vstv %s479_s13 }
  0x33   :  { %v307_v0 = vpop.eup %306  ;;  %v109_v4 = vmul.f32 %v305_v57, %v93_v23  ;;  %v115_v5 = vsub.f32 2.0, %v107_v56 }
  0x34   :  { %v309_v6 = vpop.eup %308  ;;  %v110_v9 = vmul.f32 %v307_v0, %v94_v24  ;;  %v116_v10 = vsub.f32 2.0, %v108_v63 }
  0x35   :  { %v311_v11 = vpop.eup %310  ;;  %v111_v13 = vmul.f32 %v309_v6, %v95_v26  ;;  %v117_v14 = vsub.f32 2.0, %v109_v4  ;;  %v123_v15 = vmul.f32 %v301_v49, %v115_v5 }
  0x36   :  { %v313_v16 = vpop.eup %312  ;;  %v112_v17 = vmul.f32 %v311_v11, %v96_v27  ;;  %v118_v18 = vsub.f32 2.0, %v110_v9  ;;  %v124_v19 = vmul.f32 %v303_v53, %v116_v10 }
  0x37   :  { %v315_v21 = vpop.eup %314  ;;  %v113_v22 = vmul.f32 %v313_v16, %v97_v29  ;;  %v119_v23 = vsub.f32 2.0, %v111_v13  ;;  %v125_v25 = vmul.f32 %v305_v57, %v117_v14  ;;  %v131_v28 = vmul.f32 %v123_v15, %v65_v58 }
  0x38   :  { %v114_v31 = vmul.f32 %v315_v21, %v98_v30  ;;  %v120_v32 = vsub.f32 2.0, %v112_v17  ;;  %v126_v33 = vmul.f32 %v307_v0, %v118_v18  ;;  %v132_v24 = vmul.f32 %v124_v19, %v66_v59 }
  0x39   :  { %v121_v34 = vsub.f32 2.0, %v113_v22  ;;  %v127_v35 = vmul.f32 %v309_v6, %v119_v23  ;;  %v133_v36 = vmul.f32 %v125_v25, %v67_v60  ;;  %v144_v26 = vsub.f32 %v131_v28, %v143_v20 }
  0x3a   :  { %v122_v37 = vsub.f32 2.0, %v114_v31  ;;  %v128_v38 = vmul.f32 %v311_v11, %v120_v32  ;;  %v134_v39 = vmul.f32 %v126_v33, %v68_v1  ;;  %v145_v27 = vsub.f32 %v132_v24, %v143_v20 }
  0x3b   :  { %v129_v40 = vmul.f32 %v313_v16, %v121_v34  ;;  %v135_v43 = vmul.f32 %v127_v35, %v69_v2  ;;  %v146_v45 = vsub.f32 %v133_v36, %v143_v20  ;;  %v210_v29 = vsel %vm381_vm10, %v144_v26, 0.0 }
  0x3c   :  { %v130_v46 = vmul.f32 %v315_v21, %v122_v37  ;;  %v136_v47 = vmul.f32 %v128_v38, %v70_v7  ;;  %v147_v30 = vsub.f32 %v134_v39, %v143_v20  ;;  %v211_v48 = vsel %vm385_vm11, %v145_v27, 0.0 }
  0x3d   :  { %v137_v49 = vmul.f32 %v129_v40, %v71_v8  ;;  %v148_v50 = vsub.f32 %v135_v43, %v143_v20  ;;  %v212_v52 = vsel %vm389_vm12, %v146_v45, 0.0  ;;  %v245_v53 = vadd.f32 %v211_v48, %v210_v29 }
  0x3e   :  { %v138_v54 = vmul.f32 %v130_v46, %v72_v12  ;;  %v255_v56 = vmul.f32 %v210_v29, %v210_v29  ;;  %v149_v57 = vsub.f32 %v136_v47, %v143_v20  ;;  %v213_v58 = vsel %vm399_vm13, %v147_v30, 0.0 }
  0x3f   :  { %v246_v41 = vadd.f32 %v245_v53, %v212_v52  ;;  %v256_v59 = vmul.f32 %v211_v48, %v211_v48  ;;  %v257_v60 = vmul.f32 %v212_v52, %v212_v52  ;;  %v150_v63 = vsub.f32 %v137_v49, %v143_v20 }
  0x40   :  { %v214_v42 = vsel %vm405_vm14, %v148_v50, 0.0  ;;  %v258_v1 = vmul.f32 %v213_v58, %v213_v58  ;;  %v151_v4 = vsub.f32 %v138_v54, %v143_v20  ;;  %v215_v44 = vsel %vm420_vm15, %v149_v57, 0.0 }
  0x41   :  { %v247_v0 = vadd.f32 %v246_v41, %v213_v58  ;;  %v263_v2 = vadd.f32 %v256_v59, %v255_v56  ;;  %v259_v6 = vmul.f32 %v214_v42, %v214_v42  ;;  %v216_v51 = vsel %vm424_vm0, %v150_v63, 0.0 }
  0x42   :  { %v260_v9 = vmul.f32 %v215_v44, %v215_v44  ;;  %v217_v55 = vsel %vm437_vm1, %v151_v4, 0.0  ;;  %v261_v12 = vmul.f32 %v216_v51, %v216_v51 }
  0x43   :  { %v248_v5 = vadd.f32 %v247_v0, %v214_v42  ;;  %v264_v7 = vadd.f32 %v263_v2, %v257_v60  ;;  %v262_v15 = vmul.f32 %v217_v55, %v217_v55 }
  0x45   :  { %v249_v8 = vadd.f32 %v248_v5, %v215_v44  ;;  %v265_v10 = vadd.f32 %v264_v7, %v258_v1 }
  0x47   :  { %v250_v11 = vadd.f32 %v249_v8, %v216_v51  ;;  %v266_v13 = vadd.f32 %v265_v10, %v259_v6 }
  0x49   :  { %v251_v14 = vadd.f32 %v250_v11, %v217_v55  ;;  %v267_v16 = vadd.f32 %v266_v13, %v260_v9 }
  0x4b   :  { %v268_v61 = vadd.f32 %v267_v16, %v261_v12  ;;  %253 = vst [vmem:[%s512_s5] sm:$0xff] %v251_v14 }
  0x4d   :  { %v269_v17 = vadd.f32 %v268_v61, %v262_v15 }
  0x4f   :  { %271 = vst [vmem:[%s513_s6] sm:$0xff] %v269_v17 }
  0x50   :  { %284 = vsyncpa [#allocation3], 1 }

</bundles_post_ra>
